<compile_context>
chip_gen: v7x
topology: tpu7x:2x2x1
jax: 0.10.0
libtpu: 0.0.40
codegen_flags: <defaults>
</compile_context>

<pallas_src>
import jax
import jax.numpy as jnp
from jax.experimental import pallas as pl
from jax.experimental.pallas import tpu as pltpu


LANE = 128


def _round_up(n, m):
  return ((n + m - 1) // m) * m


def deepfcn_kernel(
    x_ref,
    w1, b1,
    w2, b2,
    w31, b31, w32, b32, w33, b33,
    w4, b4,
    w5, b5,
    out_ref,
):
  """Fused forward pass: all 7 Linear layers (+ ReLUs) in one kernel body."""
  f32 = jnp.float32
  bf16 = jnp.bfloat16

  def linear_relu(h, w_ref, b_ref):
    z = jnp.dot(h.astype(bf16), w_ref[...], preferred_element_type=f32)
    z = z + b_ref[...]
    return jnp.maximum(z, 0.0)

  # fc1 + first_relu
  h = linear_relu(x_ref[...], w1, b1)
  # fc2 (Linear + ReLU)
  h = linear_relu(h, w2, b2)
  # fc3: 3 x (Linear(64,64) + ReLU)
  for w_ref, b_ref in ((w31, b31), (w32, b32), (w33, b33)):
    h = linear_relu(h, w_ref, b_ref)
  # fc4['fc4-1'] + fc4['relu']
  h = linear_relu(h, w4, b4)
  # fc5 (no final ReLU); output columns are lane-padded, padded cols stay 0.
  y = jnp.dot(h.astype(bf16), w5[...], preferred_element_type=f32) + b5[...]
  out_ref[...] = y.astype(out_ref.dtype)


def deepfcn_forward(x, params, num_classes, *, block_b=256):
  """x: [B, input_size] float32.
  params: list of (W[in, out] bf16, b[1, out] f32); last layer lane-padded to 128.
  Returns [B, num_classes] float32.
  """
  B, F = x.shape
  c_pad = params[-1][0].shape[1]          # lane-padded class dim (multiple of 128)

  # Batch tile: multiple of 8 sublanes, capped to keep VMEM footprint small.
  tb = min(block_b, _round_up(B, 8))
  b_pad = _round_up(B, tb)
  if b_pad != B:
    x = jnp.pad(x, ((0, b_pad - B), (0, 0)))
  grid = (b_pad // tb,)

  # x / out are tiled over the batch grid; weights & biases map to block 0 at
  # every grid step so they are fetched once and stay resident in VMEM.
  in_specs = [pl.BlockSpec((tb, F), lambda i: (i, 0))]
  flat_params = []
  for (w, b) in params:
    in_specs.append(pl.BlockSpec(w.shape, lambda i: (0, 0)))
    in_specs.append(pl.BlockSpec(b.shape, lambda i: (0, 0)))
    flat_params.extend([w, b])
  out_specs = pl.BlockSpec((tb, c_pad), lambda i: (i, 0))

  flops = sum(2 * b_pad * w.shape[0] * w.shape[1] for (w, _) in params)
  bytes_accessed = (
      x.size * x.dtype.itemsize
      + sum(w.size * w.dtype.itemsize + b.size * b.dtype.itemsize
            for (w, b) in params)
      + b_pad * c_pad * 4
  )

  y_pad = pl.pallas_call(
      deepfcn_kernel,
      out_shape=jax.ShapeDtypeStruct((b_pad, c_pad), jnp.float32),
      grid=grid,
      in_specs=in_specs,
      out_specs=out_specs,
      compiler_params=pltpu.CompilerParams(
          dimension_semantics=("parallel",)),
      cost_estimate=pl.CostEstimate(
          flops=flops, transcendentals=0, bytes_accessed=bytes_accessed),
  )(x, *flat_params)

  return y_pad[:B, :num_classes]


def init_params(key, input_size, num_classes):
  """Init matching PyTorch nn.Linear default U(-1/sqrt(fan_in), 1/sqrt(fan_in)).

  Weights are returned pre-transposed to [in, out] and cast to bf16 (storage /
  MXU dtype); biases are [1, out] f32.  The final layer's out dim is zero-padded
  to a multiple of 128 for a lane-dense output store.
  """
  dims = [
      (input_size, 256),               # fc1
      (256, 64),                       # fc2
      (64, 64), (64, 64), (64, 64),    # fc3 x3
      (64, 32),                        # fc4-1
      (32, num_classes),               # fc5
  ]
  params = []
  for li, (fan_in, fan_out) in enumerate(dims):
    key, kw, kb = jax.random.split(key, 3)
    bound = 1.0 / jnp.sqrt(jnp.float32(fan_in))
    w = jax.random.uniform(kw, (fan_in, fan_out), jnp.float32, -bound, bound)
    b = jax.random.uniform(kb, (1, fan_out), jnp.float32, -bound, bound)
    if li == len(dims) - 1:
      c_pad = _round_up(fan_out, LANE)
      w = jnp.pad(w, ((0, 0), (0, c_pad - fan_out)))
      b = jnp.pad(b, ((0, 0), (0, c_pad - fan_out)))
    params.append((w.astype(jnp.bfloat16), b.astype(jnp.float32)))
  return params


def deepfcn_reference(x, params, num_classes):
  """Pure-JAX reference with the same bf16-operand / f32-accumulate semantics."""
  h = x
  n = len(params)
  for i, (w, b) in enumerate(params):
    h = jnp.dot(h.astype(jnp.bfloat16), w,
                preferred_element_type=jnp.float32) + b
    if i < n - 1:  # ReLU after every layer except fc5
      h = jnp.maximum(h, 0.0)
  return h[:, :num_classes]


if __name__ == "__main__":
  INPUT_SIZE = 784   # flattened 28x28 MNIST image
  NUM_CLASSES = 10
  BATCH = 8

  key = jax.random.PRNGKey(0)
  key, kx = jax.random.split(key)
  x = jax.random.normal(kx, (BATCH, INPUT_SIZE), jnp.float32)

  params = init_params(key, INPUT_SIZE, NUM_CLASSES)

  y = deepfcn_forward(x, params, NUM_CLASSES)
  y = jax.block_until_ready(y)

  y_ref = jax.block_until_ready(deepfcn_reference(x, params, NUM_CLASSES))
  assert y.shape == (BATCH, NUM_CLASSES)
  assert jnp.allclose(y, y_ref, atol=2e-2, rtol=2e-2)

  print("KERNEL_OK")
</pallas_src>

<mosaic_0001>
module attributes {stable_mosaic.version = 11 : i64} {
  func.func @deepfcn_kernel(%arg0: i32, %arg1: memref<8x784xf32, #tpu.memory_space<vmem>>, %arg2: memref<784x256xbf16, #tpu.memory_space<vmem>>, %arg3: memref<1x256xf32, #tpu.memory_space<vmem>>, %arg4: memref<256x64xbf16, #tpu.memory_space<vmem>>, %arg5: memref<1x64xf32, #tpu.memory_space<vmem>>, %arg6: memref<64x64xbf16, #tpu.memory_space<vmem>>, %arg7: memref<1x64xf32, #tpu.memory_space<vmem>>, %arg8: memref<64x64xbf16, #tpu.memory_space<vmem>>, %arg9: memref<1x64xf32, #tpu.memory_space<vmem>>, %arg10: memref<64x64xbf16, #tpu.memory_space<vmem>>, %arg11: memref<1x64xf32, #tpu.memory_space<vmem>>, %arg12: memref<64x32xbf16, #tpu.memory_space<vmem>>, %arg13: memref<1x32xf32, #tpu.memory_space<vmem>>, %arg14: memref<32x128xbf16, #tpu.memory_space<vmem>>, %arg15: memref<1x128xf32, #tpu.memory_space<vmem>>, %arg16: memref<8x128xf32, #tpu.memory_space<vmem>>) attributes {dimension_semantics = [#tpu.dimension_semantics<parallel>], iteration_bounds = array<i64: 1>, scalar_prefetch = 0 : i64, scratch_operands = 0 : i64, tpu.core_type = #tpu.core_type<tc>, window_params = [{transform_indices = @transform_0, window_bounds = array<i64: 8, 784>}, {pipeline_mode = #tpu.pipeline_mode<synchronous>, transform_indices = @transform_1, window_bounds = array<i64: 784, 256>}, {pipeline_mode = #tpu.pipeline_mode<synchronous>, transform_indices = @transform_2, window_bounds = array<i64: 1, 256>}, {pipeline_mode = #tpu.pipeline_mode<synchronous>, transform_indices = @transform_3, window_bounds = array<i64: 256, 64>}, {pipeline_mode = #tpu.pipeline_mode<synchronous>, transform_indices = @transform_4, window_bounds = array<i64: 1, 64>}, {pipeline_mode = #tpu.pipeline_mode<synchronous>, transform_indices = @transform_5, window_bounds = array<i64: 64, 64>}, {pipeline_mode = #tpu.pipeline_mode<synchronous>, transform_indices = @transform_6, window_bounds = array<i64: 1, 64>}, {pipeline_mode = #tpu.pipeline_mode<synchronous>, transform_indices = @transform_7, window_bounds = array<i64: 64, 64>}, {pipeline_mode = #tpu.pipeline_mode<synchronous>, transform_indices = @transform_8, window_bounds = array<i64: 1, 64>}, {pipeline_mode = #tpu.pipeline_mode<synchronous>, transform_indices = @transform_9, window_bounds = array<i64: 64, 64>}, {pipeline_mode = #tpu.pipeline_mode<synchronous>, transform_indices = @transform_10, window_bounds = array<i64: 1, 64>}, {pipeline_mode = #tpu.pipeline_mode<synchronous>, transform_indices = @transform_11, window_bounds = array<i64: 64, 32>}, {pipeline_mode = #tpu.pipeline_mode<synchronous>, transform_indices = @transform_12, window_bounds = array<i64: 1, 32>}, {pipeline_mode = #tpu.pipeline_mode<synchronous>, transform_indices = @transform_13, window_bounds = array<i64: 32, 128>}, {pipeline_mode = #tpu.pipeline_mode<synchronous>, transform_indices = @transform_14, window_bounds = array<i64: 1, 128>}, {transform_indices = @transform_15, window_bounds = array<i64: 8, 128>}]} {
    %c0 = arith.constant 0 : index
    %c0_0 = arith.constant 0 : index
    %0 = vector.load %arg1[%c0, %c0_0] : memref<8x784xf32, #tpu.memory_space<vmem>>, vector<8x784xf32>
    %1 = arith.truncf %0 : vector<8x784xf32> to vector<8x784xbf16>
    %c0_1 = arith.constant 0 : index
    %c0_2 = arith.constant 0 : index
    %2 = vector.load %arg2[%c0_1, %c0_2] : memref<784x256xbf16, #tpu.memory_space<vmem>>, vector<784x256xbf16>
    %cst = arith.constant dense<0.000000e+00> : vector<8x256xf32>
    %3 = tpu.matmul %1, %2, %cst {dimension_numbers = #tpu.dot_dimension_numbers<[1], [0], [0], [1], [0, 0, 1, 1], [], []>} : vector<8x784xbf16>, vector<784x256xbf16>, vector<8x256xf32> -> vector<8x256xf32>
    %c0_3 = arith.constant 0 : index
    %c0_4 = arith.constant 0 : index
    %4 = vector.load %arg3[%c0_3, %c0_4] : memref<1x256xf32, #tpu.memory_space<vmem>>, vector<1x256xf32>
    %5 = vector.broadcast %4 : vector<1x256xf32> to vector<8x256xf32>
    %6 = arith.addf %3, %5 : vector<8x256xf32>
    %cst_5 = arith.constant 0.000000e+00 : f32
    %7 = vector.broadcast %cst_5 : f32 to vector<8x256xf32>
    %8 = arith.maximumf %6, %7 : vector<8x256xf32>
    %9 = arith.truncf %8 : vector<8x256xf32> to vector<8x256xbf16>
    %c0_6 = arith.constant 0 : index
    %c0_7 = arith.constant 0 : index
    %10 = vector.load %arg4[%c0_6, %c0_7] : memref<256x64xbf16, #tpu.memory_space<vmem>>, vector<256x64xbf16>
    %cst_8 = arith.constant dense<0.000000e+00> : vector<8x64xf32>
    %11 = tpu.matmul %9, %10, %cst_8 {dimension_numbers = #tpu.dot_dimension_numbers<[1], [0], [0], [1], [0, 0, 1, 1], [], []>} : vector<8x256xbf16>, vector<256x64xbf16>, vector<8x64xf32> -> vector<8x64xf32>
    %c0_9 = arith.constant 0 : index
    %c0_10 = arith.constant 0 : index
    %12 = vector.load %arg5[%c0_9, %c0_10] : memref<1x64xf32, #tpu.memory_space<vmem>>, vector<1x64xf32>
    %13 = vector.broadcast %12 : vector<1x64xf32> to vector<8x64xf32>
    %14 = arith.addf %11, %13 : vector<8x64xf32>
    %cst_11 = arith.constant 0.000000e+00 : f32
    %15 = vector.broadcast %cst_11 : f32 to vector<8x64xf32>
    %16 = arith.maximumf %14, %15 : vector<8x64xf32>
    %17 = arith.truncf %16 : vector<8x64xf32> to vector<8x64xbf16>
    %c0_12 = arith.constant 0 : index
    %c0_13 = arith.constant 0 : index
    %18 = vector.load %arg6[%c0_12, %c0_13] : memref<64x64xbf16, #tpu.memory_space<vmem>>, vector<64x64xbf16>
    %cst_14 = arith.constant dense<0.000000e+00> : vector<8x64xf32>
    %19 = tpu.matmul %17, %18, %cst_14 {dimension_numbers = #tpu.dot_dimension_numbers<[1], [0], [0], [1], [0, 0, 1, 1], [], []>} : vector<8x64xbf16>, vector<64x64xbf16>, vector<8x64xf32> -> vector<8x64xf32>
    %c0_15 = arith.constant 0 : index
    %c0_16 = arith.constant 0 : index
    %20 = vector.load %arg7[%c0_15, %c0_16] : memref<1x64xf32, #tpu.memory_space<vmem>>, vector<1x64xf32>
    %21 = vector.broadcast %20 : vector<1x64xf32> to vector<8x64xf32>
    %22 = arith.addf %19, %21 : vector<8x64xf32>
    %cst_17 = arith.constant 0.000000e+00 : f32
    %23 = vector.broadcast %cst_17 : f32 to vector<8x64xf32>
    %24 = arith.maximumf %22, %23 : vector<8x64xf32>
    %25 = arith.truncf %24 : vector<8x64xf32> to vector<8x64xbf16>
    %c0_18 = arith.constant 0 : index
    %c0_19 = arith.constant 0 : index
    %26 = vector.load %arg8[%c0_18, %c0_19] : memref<64x64xbf16, #tpu.memory_space<vmem>>, vector<64x64xbf16>
    %cst_20 = arith.constant dense<0.000000e+00> : vector<8x64xf32>
    %27 = tpu.matmul %25, %26, %cst_20 {dimension_numbers = #tpu.dot_dimension_numbers<[1], [0], [0], [1], [0, 0, 1, 1], [], []>} : vector<8x64xbf16>, vector<64x64xbf16>, vector<8x64xf32> -> vector<8x64xf32>
    %c0_21 = arith.constant 0 : index
    %c0_22 = arith.constant 0 : index
    %28 = vector.load %arg9[%c0_21, %c0_22] : memref<1x64xf32, #tpu.memory_space<vmem>>, vector<1x64xf32>
    %29 = vector.broadcast %28 : vector<1x64xf32> to vector<8x64xf32>
    %30 = arith.addf %27, %29 : vector<8x64xf32>
    %cst_23 = arith.constant 0.000000e+00 : f32
    %31 = vector.broadcast %cst_23 : f32 to vector<8x64xf32>
    %32 = arith.maximumf %30, %31 : vector<8x64xf32>
    %33 = arith.truncf %32 : vector<8x64xf32> to vector<8x64xbf16>
    %c0_24 = arith.constant 0 : index
    %c0_25 = arith.constant 0 : index
    %34 = vector.load %arg10[%c0_24, %c0_25] : memref<64x64xbf16, #tpu.memory_space<vmem>>, vector<64x64xbf16>
    %cst_26 = arith.constant dense<0.000000e+00> : vector<8x64xf32>
    %35 = tpu.matmul %33, %34, %cst_26 {dimension_numbers = #tpu.dot_dimension_numbers<[1], [0], [0], [1], [0, 0, 1, 1], [], []>} : vector<8x64xbf16>, vector<64x64xbf16>, vector<8x64xf32> -> vector<8x64xf32>
    %c0_27 = arith.constant 0 : index
    %c0_28 = arith.constant 0 : index
    %36 = vector.load %arg11[%c0_27, %c0_28] : memref<1x64xf32, #tpu.memory_space<vmem>>, vector<1x64xf32>
    %37 = vector.broadcast %36 : vector<1x64xf32> to vector<8x64xf32>
    %38 = arith.addf %35, %37 : vector<8x64xf32>
    %cst_29 = arith.constant 0.000000e+00 : f32
    %39 = vector.broadcast %cst_29 : f32 to vector<8x64xf32>
    %40 = arith.maximumf %38, %39 : vector<8x64xf32>
    %41 = arith.truncf %40 : vector<8x64xf32> to vector<8x64xbf16>
    %c0_30 = arith.constant 0 : index
    %c0_31 = arith.constant 0 : index
    %42 = vector.load %arg12[%c0_30, %c0_31] : memref<64x32xbf16, #tpu.memory_space<vmem>>, vector<64x32xbf16>
    %cst_32 = arith.constant dense<0.000000e+00> : vector<8x32xf32>
    %43 = tpu.matmul %41, %42, %cst_32 {dimension_numbers = #tpu.dot_dimension_numbers<[1], [0], [0], [1], [0, 0, 1, 1], [], []>} : vector<8x64xbf16>, vector<64x32xbf16>, vector<8x32xf32> -> vector<8x32xf32>
    %c0_33 = arith.constant 0 : index
    %c0_34 = arith.constant 0 : index
    %44 = vector.load %arg13[%c0_33, %c0_34] : memref<1x32xf32, #tpu.memory_space<vmem>>, vector<1x32xf32>
    %45 = vector.broadcast %44 : vector<1x32xf32> to vector<8x32xf32>
    %46 = arith.addf %43, %45 : vector<8x32xf32>
    %cst_35 = arith.constant 0.000000e+00 : f32
    %47 = vector.broadcast %cst_35 : f32 to vector<8x32xf32>
    %48 = arith.maximumf %46, %47 : vector<8x32xf32>
    %49 = arith.truncf %48 : vector<8x32xf32> to vector<8x32xbf16>
    %c0_36 = arith.constant 0 : index
    %c0_37 = arith.constant 0 : index
    %50 = vector.load %arg14[%c0_36, %c0_37] : memref<32x128xbf16, #tpu.memory_space<vmem>>, vector<32x128xbf16>
    %cst_38 = arith.constant dense<0.000000e+00> : vector<8x128xf32>
    %51 = tpu.matmul %49, %50, %cst_38 {dimension_numbers = #tpu.dot_dimension_numbers<[1], [0], [0], [1], [0, 0, 1, 1], [], []>} : vector<8x32xbf16>, vector<32x128xbf16>, vector<8x128xf32> -> vector<8x128xf32>
    %c0_39 = arith.constant 0 : index
    %c0_40 = arith.constant 0 : index
    %52 = vector.load %arg15[%c0_39, %c0_40] : memref<1x128xf32, #tpu.memory_space<vmem>>, vector<1x128xf32>
    %53 = vector.broadcast %52 : vector<1x128xf32> to vector<8x128xf32>
    %54 = arith.addf %51, %53 : vector<8x128xf32>
    %c0_41 = arith.constant 0 : index
    %c0_42 = arith.constant 0 : index
    %55 = vector.load %arg16[%c0_41, %c0_42] : memref<8x128xf32, #tpu.memory_space<vmem>>, vector<8x128xf32>
    tpu.vector_store %arg16[%c0_41, %c0_42], %54 {strides = array<i32>} : memref<8x128xf32, #tpu.memory_space<vmem>>, vector<8x128xf32>,
    return
  }
  func.func @transform_0(%arg0: i32) -> (i32, i32) {
    %c0_i32 = arith.constant 0 : i32
    %c0_i32_0 = arith.constant 0 : i32
    return %arg0, %c0_i32 : i32, i32
  }
  func.func @transform_1(%arg0: i32) -> (i32, i32) {
    %c0_i32 = arith.constant 0 : i32
    %c0_i32_0 = arith.constant 0 : i32
    %c0_i32_1 = arith.constant 0 : i32
    return %c0_i32, %c0_i32_0 : i32, i32
  }
  func.func @transform_2(%arg0: i32) -> (i32, i32) {
    %c0_i32 = arith.constant 0 : i32
    %c0_i32_0 = arith.constant 0 : i32
    %c0_i32_1 = arith.constant 0 : i32
    return %c0_i32, %c0_i32_0 : i32, i32
  }
  func.func @transform_3(%arg0: i32) -> (i32, i32) {
    %c0_i32 = arith.constant 0 : i32
    %c0_i32_0 = arith.constant 0 : i32
    %c0_i32_1 = arith.constant 0 : i32
    return %c0_i32, %c0_i32_0 : i32, i32
  }
  func.func @transform_4(%arg0: i32) -> (i32, i32) {
    %c0_i32 = arith.constant 0 : i32
    %c0_i32_0 = arith.constant 0 : i32
    %c0_i32_1 = arith.constant 0 : i32
    return %c0_i32, %c0_i32_0 : i32, i32
  }
  func.func @transform_5(%arg0: i32) -> (i32, i32) {
    %c0_i32 = arith.constant 0 : i32
    %c0_i32_0 = arith.constant 0 : i32
    %c0_i32_1 = arith.constant 0 : i32
    return %c0_i32, %c0_i32_0 : i32, i32
  }
  func.func @transform_6(%arg0: i32) -> (i32, i32) {
    %c0_i32 = arith.constant 0 : i32
    %c0_i32_0 = arith.constant 0 : i32
    %c0_i32_1 = arith.constant 0 : i32
    return %c0_i32, %c0_i32_0 : i32, i32
  }
  func.func @transform_7(%arg0: i32) -> (i32, i32) {
    %c0_i32 = arith.constant 0 : i32
    %c0_i32_0 = arith.constant 0 : i32
    %c0_i32_1 = arith.constant 0 : i32
    return %c0_i32, %c0_i32_0 : i32, i32
  }
  func.func @transform_8(%arg0: i32) -> (i32, i32) {
    %c0_i32 = arith.constant 0 : i32
    %c0_i32_0 = arith.constant 0 : i32
    %c0_i32_1 = arith.constant 0 : i32
    return %c0_i32, %c0_i32_0 : i32, i32
  }
  func.func @transform_9(%arg0: i32) -> (i32, i32) {
    %c0_i32 = arith.constant 0 : i32
    %c0_i32_0 = arith.constant 0 : i32
    %c0_i32_1 = arith.constant 0 : i32
    return %c0_i32, %c0_i32_0 : i32, i32
  }
  func.func @transform_10(%arg0: i32) -> (i32, i32) {
    %c0_i32 = arith.constant 0 : i32
    %c0_i32_0 = arith.constant 0 : i32
    %c0_i32_1 = arith.constant 0 : i32
    return %c0_i32, %c0_i32_0 : i32, i32
  }
  func.func @transform_11(%arg0: i32) -> (i32, i32) {
    %c0_i32 = arith.constant 0 : i32
    %c0_i32_0 = arith.constant 0 : i32
    %c0_i32_1 = arith.constant 0 : i32
    return %c0_i32, %c0_i32_0 : i32, i32
  }
  func.func @transform_12(%arg0: i32) -> (i32, i32) {
    %c0_i32 = arith.constant 0 : i32
    %c0_i32_0 = arith.constant 0 : i32
    %c0_i32_1 = arith.constant 0 : i32
    return %c0_i32, %c0_i32_0 : i32, i32
  }
  func.func @transform_13(%arg0: i32) -> (i32, i32) {
    %c0_i32 = arith.constant 0 : i32
    %c0_i32_0 = arith.constant 0 : i32
    %c0_i32_1 = arith.constant 0 : i32
    return %c0_i32, %c0_i32_0 : i32, i32
  }
  func.func @transform_14(%arg0: i32) -> (i32, i32) {
    %c0_i32 = arith.constant 0 : i32
    %c0_i32_0 = arith.constant 0 : i32
    %c0_i32_1 = arith.constant 0 : i32
    return %c0_i32, %c0_i32_0 : i32, i32
  }
  func.func @transform_15(%arg0: i32) -> (i32, i32) {
    %c0_i32 = arith.constant 0 : i32
    %c0_i32_0 = arith.constant 0 : i32
    return %arg0, %c0_i32 : i32, i32
  }
}

</mosaic_0001>

<bundles_post_ra>
// kernel: tpu_custom_call.1
= control target key start
LH: loop header
LB: loop body
LE: loop exit
PB: predicated region body
PF: predicated region fallthrough
CT: control target
= control target key end

     0   :  { %20 = vsyncpa [#allocation3], 0  ;;  %s2229_s0 = inlined_call_operand.vmem [shape: f32[8,784], index: 0, kind: input, shape index: {}]   ;;  %s2230_s1 = inlined_call_operand.hbm [shape: bf16[784,256], index: 1, kind: input, shape index: {}]   ;;  %s2231_s2 = inlined_call_operand.vmem [shape: f32[1,256], index: 2, kind: input, shape index: {}]   ;;  %s2232_s3 = inlined_call_operand.vmem [shape: bf16[256,64], index: 3, kind: input, shape index: {}]   ;;  %s2233_s4 = inlined_call_operand.vmem [shape: f32[1,64], index: 4, kind: input, shape index: {}]   ;;  %s2234_s5 = inlined_call_operand.vmem [shape: bf16[64,64], index: 5, kind: input, shape index: {}]   ;;  %s2235_s6 = inlined_call_operand.vmem [shape: f32[1,64], index: 6, kind: input, shape index: {}]   ;;  %s2236_s7 = inlined_call_operand.vmem [shape: bf16[64,64], index: 7, kind: input, shape index: {}]   ;;  %s2237_s8 = inlined_call_operand.vmem [shape: f32[1,64], index: 8, kind: input, shape index: {}]   ;;  %s2238_s9 = inlined_call_operand.vmem [shape: bf16[64,64], index: 9, kind: input, shape index: {}]   ;;  %s2239_s10 = inlined_call_operand.vmem [shape: f32[1,64], index: 10, kind: input, shape index: {}]   ;;  %s2240_s11 = inlined_call_operand.vmem [shape: bf16[64,32], index: 11, kind: input, shape index: {}]   ;;  %s2241_s12 = inlined_call_operand.vmem [shape: f32[1,32], index: 12, kind: input, shape index: {}]   ;;  %s2242_s13 = inlined_call_operand.vmem [shape: bf16[32,128], index: 13, kind: input, shape index: {}]   ;;  %s2243_s14 = inlined_call_operand.vmem [shape: f32[1,128], index: 14, kind: input, shape index: {}]   ;;  %s2244_s15 = inlined_call_operand.hbm [shape: f32[8,128], index: 15, kind: output, shape index: {}]  }
   0x1   :  { %21 = vsyncpa [#allocation4], 0  ;;  %s1942_s18 = smov [#allocation2]   ;;  %s1894_s22 = scalar_lea.hbm %s2230_s1, 12544 }
   0x2   :  { %s29_s19 = sshll.u32 %s1942_s18, 4  ;;  %p1895_p0 = scmp.ne.s32.totalorder %s2230_s1, %s1894_s22  ;;  %s30_s19 = int_to_ptr.vmem [resolvable:$true] %s29_s19 }
   0x3   :  { %p1898_p1 = scmp.lt.u32.totalorder %s1894_s22, %s2230_s1 }
   0x5   :  { %p1900_p2 = pnand %p1898_p1, %p1895_p0 }
   0x7   :  { %1903 = shalt.err (!%p1900_p2)
}
   0x8   :  { %s1904_s27 = scalar_lea.vmem %s30_s19, 12544  ;;  %p1909_p4 = scmp.lt.s32.totalorder %s30_s19, %s30_s19 }
   0x9   :  { %p1905_p3 = scmp.ne.s32.totalorder %s30_s19, %s1904_s27  ;;  %p1910_p5 = scmp.lt.s32.totalorder %s1904_s27, %s1904_s27 }
   0xb   :  { %p1911_p6 = por %p1910_p5, %p1909_p4 }
   0xd   :  { %p1912_p7 = pnand %p1911_p6, %p1905_p3 }
   0xf   :  { %1915 = shalt.err (!%p1912_p7)
}
  0x10   :  { %s1943_s28 = smov 128   ;;  %s1944_s29 = smov 8  }
  0x11   :  { %35 = dma.hbm_to_vmem [thread:$0]  %s2230_s1, 12544, %s30_s19, [#allocation3], %s1943_s28, %s1943_s28, %s1944_s29  }
  0x12   :  { %1938 = dma.done.wait [#allocation3], 12544  }
  0x13   :  { %1939 = vsyncadd [#allocation3], 4294954752  ;;  %v1713_v0 = vld [vmem:[#allocation2 + $0x104] ss:$8 sps:$4 sm:$0xff]   ;;  %v1715_v1 = vld [vmem:[#allocation2 + $0x100] ss:$8 sps:$4 sm:$0xff]  }
  0x14   :  { %725 = vmatprep.subr.bf16.mxu0 %v1713_v0  ;;  %v1716_v2 = vld [vmem:[#allocation2 + $0x114] ss:$8 sps:$4 sm:$0xff]   ;;  %v1718_v3 = vld [vmem:[#allocation2 + $0x110] ss:$8 sps:$4 sm:$0xff]   ;;  %v1719_v4 = vld [vmem:[#allocation2 + $0x124] ss:$8 sps:$4 sm:$0xff]  }
  0x15   :  { %726 = vmatpush1.bf16.msra.mxu0 %v1715_v1  ;;  %v1721_v5 = vld [vmem:[#allocation2 + $0x120] ss:$8 sps:$4 sm:$0xff]   ;;  %v1722_v6 = vld [vmem:[#allocation2 + $0x134] ss:$8 sps:$4 sm:$0xff]   ;;  %v1724_v7 = vld [vmem:[#allocation2 + $0x130] ss:$8 sps:$4 sm:$0xff]  }
  0x16   :  { %727 = vmatprep.subr.bf16.mxu0 %v1716_v2  ;;  %v1725_v8 = vld [vmem:[#allocation2 + $0x144] ss:$8 sps:$4 sm:$0xff]   ;;  %v1727_v9 = vld [vmem:[#allocation2 + $0x140] ss:$8 sps:$4 sm:$0xff]   ;;  %v1728_v10 = vld [vmem:[#allocation2 + $0x154] ss:$8 sps:$4 sm:$0xff]  }
  0x17   :  { %v1730_v11 = vld [vmem:[#allocation2 + $0x150] ss:$8 sps:$4 sm:$0xff]   ;;  %v1731_v12 = vld [vmem:[#allocation2 + $0x164] ss:$8 sps:$4 sm:$0xff]   ;;  %v1733_v15 = vld [vmem:[#allocation2 + $0x160] ss:$8 sps:$4 sm:$0xff]  }
  0x18   :  { %v69_v13 = vld [vmem:[%s2229_s0 + $0x18] sm:$0xff]  ;;  %v1767_v17 = vld [vmem:[#allocation2 + $0x4] ss:$8 sps:$4 sm:$0xff]   ;;  %v1772_v20 = vld [vmem:[#allocation2] ss:$8 sps:$4 sm:$0xff]   ;;  %vm680_vm0 = vcmask 130048  }
  0x19   :  { %728 = vmatpush1.bf16.msra.mxu0 %v1718_v3  ;;  %v76_v14 = vpack.c.bf16 %v69_v13, %v69_v13  ;;  %v1734_v16 = vld [vmem:[#allocation2 + $0x174] ss:$8 sps:$4 sm:$0xff]   ;;  %v1736_v18 = vld [vmem:[#allocation2 + $0x170] ss:$8 sps:$4 sm:$0xff]   ;;  %v1737_v19 = vld [vmem:[#allocation2 + $0x184] ss:$8 sps:$4 sm:$0xff]   ;;  %684 = vmatprep.subr.bf16.mxu1 %v1767_v17 }
  0x1a   :  { %729 = vmatprep.subr.bf16.mxu0 %v1719_v4  ;;  %v1773_v21 = vld [vmem:[#allocation2 + $0x14] ss:$8 sps:$4 sm:$0xff]   ;;  %685 = vmatpush1.bf16.msra.mxu1 %v1772_v20  ;;  %v1778_v22 = vld [vmem:[#allocation2 + $0x10] ss:$8 sps:$4 sm:$0xff]   ;;  %v1779_v23 = vld [vmem:[#allocation2 + $0x24] ss:$8 sps:$4 sm:$0xff]  }
  0x1b   :  { %757 = vmatprep.mubr.bf16.mxu0 %v76_v14  ;;  %686 = vmatprep.subr.bf16.mxu1 %v1773_v21  ;;  %v1739_v24 = vld [vmem:[#allocation2 + $0x180] ss:$8 sps:$4 sm:$0xff]   ;;  %v1740_v25 = vld [vmem:[#allocation2 + $0x194] ss:$8 sps:$4 sm:$0xff]   ;;  %v1742_v28 = vld [vmem:[#allocation2 + $0x190] ss:$8 sps:$4 sm:$0xff]  }
  0x1c   :  { %v1784_v26 = vld [vmem:[#allocation2 + $0x20] ss:$8 sps:$4 sm:$0xff]   ;;  %v1785_v27 = vld [vmem:[#allocation2 + $0x34] ss:$8 sps:$4 sm:$0xff]   ;;  %v1743_v29 = vld [vmem:[#allocation2 + $0x1a4] ss:$8 sps:$4 sm:$0xff]  }
  0x1d   :  { %730 = vmatpush1.bf16.msra.mxu0 %v1721_v5  ;;  %v1790_v30 = vld [vmem:[#allocation2 + $0x30] ss:$8 sps:$4 sm:$0xff]   ;;  %v1791_v31 = vld [vmem:[#allocation2 + $0x44] ss:$8 sps:$4 sm:$0xff]   ;;  %v1745_v32 = vld [vmem:[#allocation2 + $0x1a0] ss:$8 sps:$4 sm:$0xff]  }
  0x1e   :  { %731 = vmatprep.subr.bf16.mxu0 %v1722_v6  ;;  %687 = vmatpush1.bf16.msra.mxu1 %v1778_v22  ;;  %v1746_v33 = vld [vmem:[#allocation2 + $0x1b4] ss:$8 sps:$4 sm:$0xff]   ;;  %v1796_v34 = vld [vmem:[#allocation2 + $0x40] ss:$8 sps:$4 sm:$0xff]   ;;  %v1748_v36 = vld [vmem:[#allocation2 + $0x1b0] ss:$8 sps:$4 sm:$0xff]  }
  0x1f   :  { %688 = vmatprep.subr.bf16.mxu1 %v1779_v23  ;;  %v1797_v35 = vld [vmem:[#allocation2 + $0x54] ss:$8 sps:$4 sm:$0xff]   ;;  %v1749_v37 = vld [vmem:[#allocation2 + $0x1c4] ss:$8 sps:$4 sm:$0xff]   ;;  %v1802_v38 = vld [vmem:[#allocation2 + $0x50] ss:$8 sps:$4 sm:$0xff]  }
  0x20   :  { %v1803_v39 = vld [vmem:[#allocation2 + $0x64] ss:$8 sps:$4 sm:$0xff]   ;;  %v1751_v40 = vld [vmem:[#allocation2 + $0x1c0] ss:$8 sps:$4 sm:$0xff]   ;;  %v1752_v41 = vld [vmem:[#allocation2 + $0x1d4] ss:$8 sps:$4 sm:$0xff]  }
  0x21   :  { %732 = vmatpush1.bf16.msra.mxu0 %v1724_v7  ;;  %v1808_v42 = vld [vmem:[#allocation2 + $0x60] ss:$8 sps:$4 sm:$0xff]   ;;  %v1809_v43 = vld [vmem:[#allocation2 + $0x74] ss:$8 sps:$4 sm:$0xff]   ;;  %v1754_v44 = vld [vmem:[#allocation2 + $0x1d0] ss:$8 sps:$4 sm:$0xff]  }
  0x22   :  { %733 = vmatprep.subr.bf16.mxu0 %v1725_v8  ;;  %689 = vmatpush1.bf16.msra.mxu1 %v1784_v26  ;;  %v1755_v45 = vld [vmem:[#allocation2 + $0x1e4] ss:$8 sps:$4 sm:$0xff]   ;;  %v1814_v46 = vld [vmem:[#allocation2 + $0x70] ss:$8 sps:$4 sm:$0xff]   ;;  %v1757_v48 = vld [vmem:[#allocation2 + $0x1e0] ss:$8 sps:$4 sm:$0xff]  }
  0x23   :  { %690 = vmatprep.subr.bf16.mxu1 %v1785_v27  ;;  %v1815_v47 = vld [vmem:[#allocation2 + $0x84] ss:$8 sps:$4 sm:$0xff]   ;;  %v1758_v49 = vld [vmem:[#allocation2 + $0x1f4] ss:$8 sps:$4 sm:$0xff]   ;;  %v1820_v50 = vld [vmem:[#allocation2 + $0x80] ss:$8 sps:$4 sm:$0xff]  }
  0x24   :  { %v1760_v51 = vld [vmem:[#allocation2 + $0x1f0] ss:$8 sps:$4 sm:$0xff]   ;;  %v1821_v52 = vld [vmem:[#allocation2 + $0x94] ss:$8 sps:$4 sm:$0xff]   ;;  %v1763_v54 = vld [vmem:[#allocation2 + $0x204] ss:$8 sps:$4 sm:$0xff]  }
  0x25   :  { %734 = vmatpush1.bf16.msra.mxu0 %v1727_v9  ;;  %v68_v53 = vld [vmem:[%s2229_s0 + $0x10] sm:$0xff]  ;;  %v1827_v56 = vld [vmem:[#allocation2 + $0xa4] ss:$8 sps:$4 sm:$0xff]   ;;  %v1761_v59 = vld [vmem:[#allocation2 + $0x200] ss:$8 sps:$4 sm:$0xff]   ;;  %vm1947_vm1 = vmmov 0  }
  0x26   :  { %735 = vmatprep.subr.bf16.mxu0 %v1728_v10  ;;  %691 = vmatpush1.bf16.msra.mxu1 %v1790_v30  ;;  %v1826_v55 = vld [vmem:[#allocation2 + $0x90] ss:$8 sps:$4 sm:$0xff]   ;;  %v75_v57 = vpack.c.bf16 %v68_v53, %v68_v53  ;;  %v71_v58 = vld [vmem:[%s2229_s0 + $0x28] sm:$0xff]  ;;  %v1766_v61 = vld [vmem:[#allocation2 + $0x214] ss:$8 sps:$4 sm:$0xff]   ;;  %vm1068_vm2 = vcmask 523264  }
  0x27   :  { %692 = vmatprep.subr.bf16.mxu1 %v1791_v31  ;;  %v78_v60 = vpack.c.bf16 %v71_v58, %v71_v58  ;;  %v1832_v62 = vld [vmem:[#allocation2 + $0xa0] ss:$8 sps:$4 sm:$0xff]   ;;  %v1833_v63 = vld [vmem:[#allocation2 + $0xb4] ss:$8 sps:$4 sm:$0xff]   ;;  %v1764_v1 = vld [vmem:[#allocation2 + $0x210] ss:$8 sps:$4 sm:$0xff]  }
  0x28   :  { %v67_v0 = vld [vmem:[%s2229_s0 + $0x8] sm:$0xff]  ;;  %v1838_v4 = vld [vmem:[#allocation2 + $0xb0] ss:$8 sps:$4 sm:$0xff]   ;;  %v1777_v7 = vld [vmem:[#allocation2 + $0x234] ss:$8 sps:$4 sm:$0xff]   ;;  %vm1389_vm3 = vcmask 261120  }
  0x29   :  { %736 = vmatpush1.bf16.msra.mxu0 %v1730_v11  ;;  %v74_v2 = vpack.c.bf16 %v67_v0, %v67_v0  ;;  %v1771_v3 = vld [vmem:[#allocation2 + $0x224] ss:$8 sps:$4 sm:$0xff]   ;;  %v1769_v6 = vld [vmem:[#allocation2 + $0x220] ss:$8 sps:$4 sm:$0xff]   ;;  %v1845_v9 = vld [vmem:[#allocation2 + $0xd4] ss:$8 sps:$4 sm:$0xff]  }
  0x2a   :  { %737 = vmatprep.subr.bf16.mxu0 %v1731_v12  ;;  %693 = vmatpush1.bf16.msra.mxu1 %v1796_v34  ;;  %v1839_v5 = vld [vmem:[#allocation2 + $0xc4] ss:$8 sps:$4 sm:$0xff]   ;;  %v1844_v8 = vld [vmem:[#allocation2 + $0xc0] ss:$8 sps:$4 sm:$0xff]   ;;  %v1775_v10 = vld [vmem:[#allocation2 + $0x230] ss:$8 sps:$4 sm:$0xff]  }
  0x2b   :  { %694 = vmatprep.subr.bf16.mxu1 %v1797_v35  ;;  %716 = vmatprep.mubr.bf16.mxu1 %v74_v2  ;;  %v1783_v11 = vld [vmem:[#allocation2 + $0x244] ss:$8 sps:$4 sm:$0xff]   ;;  %v1781_v12 = vld [vmem:[#allocation2 + $0x240] ss:$8 sps:$4 sm:$0xff]   ;;  %v1850_v13 = vld [vmem:[#allocation2 + $0xd0] ss:$8 sps:$4 sm:$0xff]  }
  0x2c   :  { %v1851_v14 = vld [vmem:[#allocation2 + $0xe4] ss:$8 sps:$4 sm:$0xff]   ;;  %v1857_v17 = vld [vmem:[#allocation2 + $0xf4] ss:$8 sps:$4 sm:$0xff]   ;;  %v1859_v20 = vld [vmem:[#allocation2 + $0xf0] ss:$8 sps:$4 sm:$0xff]  }
  0x2d   :  { %738 = vmatpush1.bf16.msra.mxu0 %v1733_v15  ;;  %v1789_v15 = vld [vmem:[#allocation2 + $0x254] ss:$8 sps:$4 sm:$0xff]   ;;  %v66_v21 = vld [vmem:[%s2229_s0] sm:$0xff]  ;;  %v1862_v27 = vld [vmem:[%s2232_s3 + $0x48] sm:$0xff]   ;;  %v1946_v2 = vmov 0.0   ;;  %s1948_s16 = smov [#allocation5]  }
  0x2e   :  { %739 = vmatprep.subr.bf16.mxu0 %v1734_v16  ;;  %695 = vmatpush1.bf16.msra.mxu1 %v1802_v38  ;;  %v1856_v16 = vld [vmem:[#allocation2 + $0xe0] ss:$8 sps:$4 sm:$0xff]   ;;  %v73_v26 = vpack.c.bf16 %v66_v21, %v66_v21  ;;  %v1864_v31 = vld [vmem:[%s2232_s3 + $0x50] sm:$0xff]   ;;  %v1866_v35 = vld [vmem:[%s2232_s3 + $0x58] sm:$0xff]  }
  0x2f   :  { %696 = vmatprep.subr.bf16.mxu1 %v1803_v39  ;;  %v1860_v22 = vld [vmem:[%s2232_s3 + $0x40] sm:$0xff]   ;;  %v1863_v30 = vld [vmem:[%s2232_s3 + $0x8] sm:$0xff]   ;;  %v1865_v34 = vld [vmem:[%s2232_s3 + $0x10] sm:$0xff]  }
  0x30   :  { %v1793_v23 = vld [vmem:[#allocation2 + $0x260] ss:$8 sps:$4 sm:$0xff]   ;;  %v1867_v38 = vld [vmem:[%s2232_s3 + $0x18] sm:$0xff]   ;;  %v1855_v53 = vld [vmem:[#allocation2 + $0x304] ss:$8 sps:$4 sm:$0xff]  }
  0x31   :  { %740 = vmatpush1.bf16.msra.mxu0 %v1736_v18  ;;  %v1787_v18 = vld [vmem:[#allocation2 + $0x250] ss:$8 sps:$4 sm:$0xff]   ;;  %v1868_v39 = vld [vmem:[%s2232_s3 + $0x60] sm:$0xff]  }
  0x32   :  { %741 = vmatprep.subr.bf16.mxu0 %v1737_v19  ;;  %697 = vmatpush1.bf16.msra.mxu1 %v1808_v42  ;;  %v1795_v19 = vld [vmem:[#allocation2 + $0x264] ss:$8 sps:$4 sm:$0xff]   ;;  %v1875_v0 = vld [vmem:[%s2232_s3 + $0x38] sm:$0xff]  }
  0x33   :  { %698 = vmatprep.subr.bf16.mxu1 %v1809_v43  ;;  %v1869_v42 = vld [vmem:[%s2232_s3 + $0x20] sm:$0xff]   ;;  %v1823_v43 = vld [vmem:[#allocation2 + $0x2b0] ss:$8 sps:$4 sm:$0xff]  }
  0x35   :  { %742 = vmatpush1.bf16.msra.mxu0 %v1739_v24  ;;  %v1801_v24 = vld [vmem:[#allocation2 + $0x274] ss:$8 sps:$4 sm:$0xff]  }
  0x36   :  { %743 = vmatprep.subr.bf16.mxu0 %v1740_v25  ;;  %699 = vmatpush1.bf16.msra.mxu1 %v1814_v46  ;;  %v1861_v25 = vld [vmem:[%s2232_s3] sm:$0xff]   ;;  %v1837_v46 = vld [vmem:[#allocation2 + $0x2d4] ss:$8 sps:$4 sm:$0xff]  }
  0x37   :  { %700 = vmatprep.subr.bf16.mxu1 %v1815_v47  ;;  %v1835_v47 = vld [vmem:[#allocation2 + $0x2d0] ss:$8 sps:$4 sm:$0xff]  }
  0x39   :  { %744 = vmatpush1.bf16.msra.mxu0 %v1742_v28  ;;  %v1799_v28 = vld [vmem:[#allocation2 + $0x270] ss:$8 sps:$4 sm:$0xff]  }
  0x3a   :  { %745 = vmatprep.subr.bf16.mxu0 %v1743_v29  ;;  %701 = vmatpush1.bf16.msra.mxu1 %v1820_v50  ;;  %v1807_v29 = vld [vmem:[#allocation2 + $0x284] ss:$8 sps:$4 sm:$0xff]   ;;  %v1849_v50 = vld [vmem:[#allocation2 + $0x2f4] ss:$8 sps:$4 sm:$0xff]  }
  0x3b   :  { %702 = vmatprep.subr.bf16.mxu1 %v1821_v52  ;;  %v70_v52 = vld [vmem:[%s2229_s0 + $0x20] sm:$0xff] }
  0x3d   :  { %746 = vmatpush1.bf16.msra.mxu0 %v1745_v32  ;;  %v1805_v32 = vld [vmem:[#allocation2 + $0x280] ss:$8 sps:$4 sm:$0xff]  }
  0x3e   :  { %747 = vmatprep.subr.bf16.mxu0 %v1746_v33  ;;  %703 = vmatpush1.bf16.msra.mxu1 %v1826_v55  ;;  %v1813_v33 = vld [vmem:[#allocation2 + $0x294] ss:$8 sps:$4 sm:$0xff]   ;;  %v1853_v55 = vld [vmem:[#allocation2 + $0x300] ss:$8 sps:$4 sm:$0xff]  }
  0x3f   :  { %704 = vmatprep.subr.bf16.mxu1 %v1827_v56  ;;  %v1945_v56 = vmov 0  }
  0x41   :  { %748 = vmatpush1.bf16.msra.mxu0 %v1748_v36  ;;  %v1811_v36 = vld [vmem:[#allocation2 + $0x290] ss:$8 sps:$4 sm:$0xff]  }
  0x42   :  { %749 = vmatprep.subr.bf16.mxu0 %v1749_v37  ;;  %705 = vmatpush1.bf16.msra.mxu1 %v1832_v62  ;;  %v1819_v37 = vld [vmem:[#allocation2 + $0x2a4] ss:$8 sps:$4 sm:$0xff]   ;;  %v1873_v62 = vld [vmem:[%s2232_s3 + $0x30] sm:$0xff]  }
  0x43   :  { %706 = vmatprep.subr.bf16.mxu1 %v1833_v63  ;;  %v1874_v63 = vld [vmem:[%s2232_s3 + $0x78] sm:$0xff]  }
  0x45   :  { %750 = vmatpush1.bf16.msra.mxu0 %v1751_v40  ;;  %v1817_v40 = vld [vmem:[#allocation2 + $0x2a0] ss:$8 sps:$4 sm:$0xff]  }
  0x46   :  { %751 = vmatprep.subr.bf16.mxu0 %v1752_v41  ;;  %707 = vmatpush1.bf16.msra.mxu1 %v1838_v4  ;;  %v1825_v41 = vld [vmem:[#allocation2 + $0x2b4] ss:$8 sps:$4 sm:$0xff]  }
  0x47   :  { %708 = vmatprep.subr.bf16.mxu1 %v1839_v5 }
  0x49   :  { %752 = vmatpush1.bf16.msra.mxu0 %v1754_v44  ;;  %v1831_v44 = vld [vmem:[#allocation2 + $0x2c4] ss:$8 sps:$4 sm:$0xff]  }
  0x4a   :  { %753 = vmatprep.subr.bf16.mxu0 %v1755_v45  ;;  %709 = vmatpush1.bf16.msra.mxu1 %v1844_v8  ;;  %v1829_v45 = vld [vmem:[#allocation2 + $0x2c0] ss:$8 sps:$4 sm:$0xff]   ;;  %v180_v8 = vlaneseq }
  0x4b   :  { %710 = vmatprep.subr.bf16.mxu1 %v1845_v9 }
  0x4c   :  { %v181_v9 = vshrl.u32 %v180_v8, 7 }
  0x4d   :  { %754 = vmatpush1.bf16.msra.mxu0 %v1757_v48  ;;  %v1843_v48 = vld [vmem:[#allocation2 + $0x2e4] ss:$8 sps:$4 sm:$0xff]  }
  0x4e   :  { %755 = vmatprep.subr.bf16.mxu0 %v1758_v49  ;;  %711 = vmatpush1.bf16.msra.mxu1 %v1850_v13  ;;  %v1841_v49 = vld [vmem:[#allocation2 + $0x2e0] ss:$8 sps:$4 sm:$0xff]  }
  0x4f   :  { %712 = vmatprep.subr.bf16.mxu1 %v1851_v14 }
  0x51   :  { %756 = vmatpush1.bf16.msra.mxu0 %v1760_v51  ;;  %v1847_v51 = vld [vmem:[#allocation2 + $0x2f0] ss:$8 sps:$4 sm:$0xff]  }
  0x52   :  { %766 = vmatprep.subr.bf16.mxu0 %v1763_v54  ;;  %713 = vmatpush1.bf16.msra.mxu1 %v1856_v16  ;;  %v77_v54 = vpack.c.bf16 %v70_v52, %v70_v52  ;;  %v1886_v52 = vld [vmem:[%s2238_s9 + $0x10] sm:$0xff]  }
  0x53   :  { %714 = vmatprep.subr.bf16.mxu1 %v1857_v17 }
  0x54   :  { %758 = vmatmul.mubr.bf16.vlgmr.msra.gmra.mrb[0].mxu0 %v75_v57  ;;  %v72_v57 = vld [vmem:[%s2229_s0 + $0x30] sm:$0xff] }
  0x55   :  { %767 = vmatpush1.bf16.msra.mxu0 %v1761_v59  ;;  %798 = vmatprep.mubr.bf16.mxu0 %v78_v60  ;;  %v79_v58 = vpack.c.bf16 %v72_v57, %v72_v57  ;;  %v1870_v59 = vld [vmem:[%s2232_s3 + $0x68] sm:$0xff]  }
  0x56   :  { %768 = vmatprep.subr.bf16.mxu0 %v1766_v61  ;;  %715 = vmatpush1.bf16.msra.mxu1 %v1859_v20  ;;  %v1871_v60 = vld [vmem:[%s2232_s3 + $0x28] sm:$0xff]   ;;  %v1872_v61 = vld [vmem:[%s2232_s3 + $0x70] sm:$0xff]  }
  0x57   :  { %1593 = vmatprep.subr.bf16.mxu1 %v1860_v22 }
  0x59   :  { %769 = vmatpush1.bf16.msra.mxu0 %v1764_v1  ;;  %717 = vmatmul.mubr.bf16.vlgmr.msra.gmra.mrb[0].mxu1 %v73_v26  ;;  %v1876_v1 = vld [vmem:[%s2234_s5] sm:$0xff]  }
  0x5a   :  { %770 = vmatprep.subr.bf16.mxu0 %v1771_v3  ;;  %1594 = vmatpush3.bf16.msra.mxu1 %v1861_v25  ;;  %v1877_v3 = vld [vmem:[%s2234_s5 + $0x8] sm:$0xff]  }
  0x5b   :  { %1595 = vmatprep.subr.bf16.mxu1 %v1862_v27  ;;  %v1878_v27 = vld [vmem:[%s2234_s5 + $0x10] sm:$0xff]  }
  0x5d   :  { %771 = vmatpush1.bf16.msra.mxu0 %v1769_v6 }
  0x5e   :  { %772 = vmatprep.subr.bf16.mxu0 %v1777_v7  ;;  %1596 = vmatpush3.bf16.msra.mxu1 %v1863_v30  ;;  %v1881_v30 = vld [vmem:[%s2236_s7 + $0x8] sm:$0xff]  }
  0x5f   :  { %1597 = vmatprep.subr.bf16.mxu1 %v1864_v31 }
  0x61   :  { %773 = vmatpush1.bf16.msra.mxu0 %v1775_v10  ;;  %v182_v10 = vsub.s32 0, %v181_v9 }
  0x62   :  { %774 = vmatprep.subr.bf16.mxu0 %v1783_v11  ;;  %1598 = vmatpush3.bf16.msra.mxu1 %v1865_v34  ;;  %v178_v11 = vld [vmem:[%s2231_s2] sm:$0x3] }
  0x63   :  { %1599 = vmatprep.subr.bf16.mxu1 %v1866_v35  ;;  %v183_v13 = vrot.slane %v178_v11, %v182_v10 }
  0x65   :  { %775 = vmatpush1.bf16.msra.mxu0 %v1781_v12  ;;  %v186_v12 = vsub.s32 1, %v181_v9 }
  0x66   :  { %776 = vmatprep.subr.bf16.mxu0 %v1789_v15  ;;  %1600 = vmatpush3.bf16.msra.mxu1 %v1867_v38 }
  0x67   :  { %1601 = vmatprep.subr.bf16.mxu1 %v1868_v39  ;;  %v187_v14 = vrot.slane %v178_v11, %v186_v12  ;;  %v1892_v11 = vld [vmem:[%s2242_s13] sm:$0xff]   ;;  %v1893_v12 = vld [vmem:[%s2242_s13 + $0x8] sm:$0xff]   ;;  %s1440_s13 = sshll.u32 %s1948_s16, 4  ;;  %s1441_s13 = int_to_ptr.vmem [resolvable:$true] %s1440_s13 }
  0x68   :  { %p1921_p9 = scmp.lt.s32.totalorder %s1441_s13, %s1441_s13 }
  0x69   :  { %777 = vmatpush1.bf16.msra.mxu0 %v1787_v18 }
  0x6a   :  { %778 = vmatprep.subr.bf16.mxu0 %v1795_v19  ;;  %1602 = vmatpush3.bf16.msra.mxu1 %v1869_v42  ;;  %v1565_v42 = vld [vmem:[%s2235_s6] ss:$0 sm:$0xff] }
  0x6b   :  { %1603 = vmatprep.subr.bf16.mxu1 %v1870_v59 }
  0x6d   :  { %779 = vmatpush1.bf16.msra.mxu0 %v1793_v23 }
  0x6e   :  { %780 = vmatprep.subr.bf16.mxu0 %v1801_v24  ;;  %1604 = vmatpush3.bf16.msra.mxu1 %v1871_v60 }
  0x6f   :  { %1605 = vmatprep.subr.bf16.mxu1 %v1872_v61  ;;  %v1888_v61 = vld [vmem:[%s2240_s11] sm:$0xff]  }
  0x71   :  { %781 = vmatpush1.bf16.msra.mxu0 %v1799_v28  ;;  %v1879_v28 = vld [vmem:[%s2234_s5 + $0x18] sm:$0xff]  }
  0x72   :  { %782 = vmatprep.subr.bf16.mxu0 %v1807_v29  ;;  %1606 = vmatpush3.bf16.msra.mxu1 %v1873_v62  ;;  %v1880_v29 = vld [vmem:[%s2236_s7] sm:$0xff]  }
  0x73   :  { %1607 = vmatprep.subr.bf16.mxu1 %v1874_v63  ;;  %v1889_v63 = vld [vmem:[%s2240_s11 + $0x8] sm:$0xff]  }
  0x75   :  { %783 = vmatpush1.bf16.msra.mxu0 %v1805_v32  ;;  %v1548_v32 = vld [vmem:[%s2233_s4] ss:$0 sm:$0xff] }
  0x76   :  { %784 = vmatprep.subr.bf16.mxu0 %v1813_v33  ;;  %1608 = vmatpush3.bf16.msra.mxu1 %v1875_v0  ;;  %v1890_v0 = vld [vmem:[%s2240_s11 + $0x10] sm:$0xff]  }
  0x77   :  { %1650 = vmatprep.subr.bf16.mxu1 %v1946_v2 }
  0x79   :  { %785 = vmatpush1.bf16.msra.mxu0 %v1811_v36 }
  0x7a   :  { %786 = vmatprep.subr.bf16.mxu0 %v1819_v37 }
  0x7d   :  { %787 = vmatpush1.bf16.msra.mxu0 %v1817_v40  ;;  %v1882_v40 = vld [vmem:[%s2236_s7 + $0x10] sm:$0xff]  }
  0x7e   :  { %788 = vmatprep.subr.bf16.mxu0 %v1825_v41  ;;  %v1883_v41 = vld [vmem:[%s2236_s7 + $0x18] sm:$0xff]  }
  0x81   :  { %789 = vmatpush1.bf16.msra.mxu0 %v1823_v43 }
  0x82   :  { %790 = vmatprep.subr.bf16.mxu0 %v1831_v44 }
  0x85   :  { %791 = vmatpush1.bf16.msra.mxu0 %v1829_v45 }
  0x86   :  { %792 = vmatprep.subr.bf16.mxu0 %v1837_v46 }
  0x89   :  { %793 = vmatpush1.bf16.msra.mxu0 %v1835_v47 }
  0x8a   :  { %794 = vmatprep.subr.bf16.mxu0 %v1843_v48 }
  0x8d   :  { %795 = vmatpush1.bf16.msra.mxu0 %v1841_v49  ;;  %v1884_v49 = vld [vmem:[%s2238_s9] sm:$0xff]  }
  0x8e   :  { %796 = vmatprep.subr.bf16.mxu0 %v1849_v50 }
  0x91   :  { %797 = vmatpush1.bf16.msra.mxu0 %v1847_v51  ;;  %v1885_v51 = vld [vmem:[%s2238_s9 + $0x8] sm:$0xff]  }
  0x92   :  { %807 = vmatprep.subr.bf16.mxu0 %v1855_v53  ;;  %v1887_v53 = vld [vmem:[%s2238_s9 + $0x18] sm:$0xff]  }
  0x94   :  { %799 = vmatmul.mubr.bf16.vlgmr.msra.gmra.mrb[0].mxu0 %v77_v54  ;;  %v1571_v54 = vld [vmem:[%s2237_s8] ss:$0 sm:$0xff] }
  0x95   :  { %808 = vmatpush1.bf16.msra.mxu0 %v1853_v55  ;;  %839 = vmatprep.mubr.bf16.mxu0 %v1945_v56 }
  0x96   :  { %1638 = vmatprep.subr.bf16.mxu0 %v1946_v2 }
  0xa0   :  { %1547 = vmatmul.mubr.msk.bf16.vlgmr.msra.gmra.mrb[0].mxu0 %vm680_vm0, %v79_v58 }
  0xa1   :  { %1639 = vmatpush3.bf16.msra.mxu0 %v1876_v1  ;;  %1646 = vmatprep.mubr.msk.bf16.mxu0 %vm1947_vm1, %v1946_v2  ;;  %v1891_v1 = vld [vmem:[%s2240_s11 + $0x18] sm:$0xff]  }
  0xa2   :  { %1640 = vmatprep.subr.bf16.mxu0 %v1946_v2 }
  0xa5   :  { %1641 = vmatpush3.bf16.msra.mxu0 %v1877_v3  ;;  %v1577_v3 = vld [vmem:[%s2239_s10] ss:$0 sm:$0xff] }
  0xa6   :  { %1642 = vmatprep.subr.bf16.mxu0 %v1946_v2 }
  0xa9   :  { %1643 = vmatpush3.bf16.msra.mxu0 %v1878_v27 }
  0xaa   :  { %1644 = vmatprep.subr.bf16.mxu0 %v1946_v2 }
  0xad   :  { %1645 = vmatpush3.bf16.msra.mxu0 %v1879_v28 }
 0x12c   :  { %v718_v4 = vpop.f32.mrb[0].mxu1 }
 0x12d   :  { %v720_v5 = vpop.f32.mrb[1].mxu1  ;;  %v719_v15 = vadd.f32 %v718_v4, %v183_v13  ;;  %v1583_v13 = vld [vmem:[%s2241_s12] ss:$0 sm:$0xff]  ;;  %s1916_s12 = scalar_lea.vmem %s1441_s13, 128 }
 0x12e   :  { %v722_v6 = vpop.f32.mrb[2].mxu1  ;;  %v721_v16 = vadd.f32 %v720_v5, %v187_v14  ;;  %p1917_p8 = scmp.ne.s32.totalorder %s1441_s13, %s1916_s12  ;;  %p1922_p10 = scmp.lt.s32.totalorder %s1916_s12, %s1916_s12 }
 0x12f   :  { %v723_v7 = vpop.f32.mrb[3].mxu1 }
 0x130   :  { %p1923_p11 = por %p1922_p10, %p1921_p9 }
 0x132   :  { %p1924_p12 = pnand %p1923_p11, %p1917_p8 }
 0x173   :  { %v841_v17 = vpop.f32.mrb[0].mxu0 }
 0x174   :  { %v1695_v18 = vadd.f32 %v841_v17, %v719_v15  ;;  %v843_v19 = vpop.f32.mrb[1].mxu0 }
 0x175   :  { %v1697_v20 = vadd.f32 %v843_v19, %v721_v16  ;;  %v845_v21 = vpop.f32.mrb[2].mxu0 }
 0x176   :  { %v848_v22 = vmax.f32 %v1695_v18, 0.0  ;;  %v846_v23 = vpop.f32.mrb[3].mxu0 }
 0x177   :  { %v849_v24 = vmax.f32 %v1697_v20, 0.0 }
 0x178   :  { %v850_v26 = vpack.c.bf16 %v848_v22, %v848_v22 }
 0x179   :  { %v851_v25 = vpack.c.bf16 %v849_v24, %v849_v24 }
 0x17b   :  { %1019 = vmatprep.mubr.bf16.mxu1 %v851_v25 }
 0x17c   :  { %1020 = vmatmul.mubr.bf16.vlgmr.msra.gmra.mrb[4].mxu1 %v850_v26 }
 0x17d   :  { %1658 = vmatprep.mubr.msk.bf16.mxu1 %vm1947_vm1, %v1946_v2  ;;  %1651 = vmatpush3.bf16.msra.mxu1 %v1880_v29 }
 0x17e   :  { %1652 = vmatprep.subr.bf16.mxu1 %v1946_v2 }
 0x181   :  { %1653 = vmatpush3.bf16.msra.mxu1 %v1881_v30 }
 0x182   :  { %1654 = vmatprep.subr.bf16.mxu1 %v1946_v2 }
 0x185   :  { %1655 = vmatpush3.bf16.msra.mxu1 %v1882_v40 }
 0x186   :  { %1656 = vmatprep.subr.bf16.mxu1 %v1946_v2 }
 0x189   :  { %1657 = vmatpush3.bf16.msra.mxu1 %v1883_v41 }
 0x18a   :  { %1662 = vmatprep.subr.bf16.mxu1 %v1946_v2 }
 0x24f   :  { %v1609_v31 = vpop.f32.mrb[4].mxu1 }
 0x250   :  { %v1610_v33 = vpop.f32.mrb[5].mxu1 }
 0x251   :  { %v1611_v34 = vadd.f32 %v1610_v33, %v1609_v31  ;;  %v1612_v35 = vpop.f32.mrb[6].mxu1 }
 0x252   :  { %v1613_v36 = vpop.f32.mrb[7].mxu1 }
 0x253   :  { %v1022_v37 = vadd.f32 %v1611_v34, %v1548_v32 }
 0x255   :  { %v1027_v38 = vmax.f32 %v1022_v37, 0.0 }
 0x257   :  { %v1028_v39 = vpack.c.bf16 %v1027_v38, %v1027_v38 }
 0x259   :  { %1647 = vmatmul.mubr.msk.bf16.vlgmr.msra.gmra.mrb[4].mxu0 %vm1068_vm2, %v1028_v39 }
 0x32c   :  { %v1106_v43 = vpop.f32.mrb[4].mxu0 }
 0x32d   :  { %v1107_v44 = vadd.f32 %v1565_v42, %v1106_v43  ;;  %v1648_v45 = vpop.f32.mrb[5].mxu0 }
 0x32e   :  { %v1109_v46 = vpop.f32.mrb[6].mxu0 }
 0x32f   :  { %v1112_v47 = vmax.f32 %v1107_v44, 0.0  ;;  %v1649_v48 = vpop.f32.mrb[7].mxu0 }
 0x331   :  { %v1113_v50 = vpack.c.bf16 %v1112_v47, %v1112_v47 }
 0x333   :  { %1659 = vmatmul.mubr.msk.bf16.vlgmr.msra.gmra.mrb[8].mxu1 %vm1068_vm2, %v1113_v50 }
 0x334   :  { %1663 = vmatpush3.bf16.msra.mxu1 %v1884_v49  ;;  %1670 = vmatprep.mubr.msk.bf16.mxu1 %vm1947_vm1, %v1946_v2 }
 0x335   :  { %1664 = vmatprep.subr.bf16.mxu1 %v1946_v2 }
 0x338   :  { %1665 = vmatpush3.bf16.msra.mxu1 %v1885_v51 }
 0x339   :  { %1666 = vmatprep.subr.bf16.mxu1 %v1946_v2 }
 0x33c   :  { %1667 = vmatpush3.bf16.msra.mxu1 %v1886_v52 }
 0x33d   :  { %1668 = vmatprep.subr.bf16.mxu1 %v1946_v2 }
 0x340   :  { %1669 = vmatpush3.bf16.msra.mxu1 %v1887_v53 }
 0x341   :  { %1674 = vmatprep.subr.bf16.mxu1 %v1946_v2 }
 0x406   :  { %v1190_v55 = vpop.f32.mrb[8].mxu1 }
 0x407   :  { %v1191_v56 = vadd.f32 %v1571_v54, %v1190_v55  ;;  %v1660_v57 = vpop.f32.mrb[9].mxu1 }
 0x408   :  { %v1193_v58 = vpop.f32.mrb[10].mxu1 }
 0x409   :  { %v1196_v59 = vmax.f32 %v1191_v56, 0.0  ;;  %v1661_v60 = vpop.f32.mrb[11].mxu1 }
 0x40b   :  { %v1197_v62 = vpack.c.bf16 %v1196_v59, %v1196_v59 }
 0x40d   :  { %1671 = vmatmul.mubr.msk.bf16.vlgmr.msra.gmra.mrb[12].mxu1 %vm1068_vm2, %v1197_v62 }
 0x40e   :  { %1675 = vmatpush3.bf16.msra.mxu1 %v1888_v61  ;;  %1682 = vmatprep.mubr.msk.bf16.mxu1 %vm1947_vm1, %v1946_v2 }
 0x40f   :  { %1676 = vmatprep.subr.bf16.mxu1 %v1946_v2 }
 0x412   :  { %1677 = vmatpush3.bf16.msra.mxu1 %v1889_v63 }
 0x413   :  { %1678 = vmatprep.subr.bf16.mxu1 %v1946_v2 }
 0x416   :  { %1679 = vmatpush3.bf16.msra.mxu1 %v1890_v0 }
 0x417   :  { %1680 = vmatprep.subr.bf16.mxu1 %v1946_v2 }
 0x41a   :  { %1681 = vmatpush3.bf16.msra.mxu1 %v1891_v1 }
 0x41b   :  { %1686 = vmatprep.subr.bf16.mxu1 %v1946_v2 }
 0x4e0   :  { %v1274_v4 = vpop.f32.mrb[12].mxu1 }
 0x4e1   :  { %v1275_v5 = vadd.f32 %v1577_v3, %v1274_v4  ;;  %v1672_v6 = vpop.f32.mrb[13].mxu1 }
 0x4e2   :  { %v1277_v7 = vpop.f32.mrb[14].mxu1 }
 0x4e3   :  { %v1280_v8 = vmax.f32 %v1275_v5, 0.0  ;;  %v1673_v9 = vpop.f32.mrb[15].mxu1 }
 0x4e5   :  { %v1281_v10 = vpack.c.bf16 %v1280_v8, %v1280_v8 }
 0x4e7   :  { %1683 = vmatmul.mubr.msk.bf16.vlgmr.msra.gmra.mrb[16].mxu1 %vm1068_vm2, %v1281_v10 }
 0x4e8   :  { %1690 = vmatprep.mubr.msk.bf16.mxu1 %vm1947_vm1, %v1946_v2  ;;  %1687 = vmatpush3.bf16.msra.mxu1 %v1892_v11 }
 0x4e9   :  { %1688 = vmatprep.subr.bf16.mxu1 %v1946_v2  ;;  %v1589_v2 = vld [vmem:[%s2243_s14] ss:$0 sm:$0xff] }
 0x4ec   :  { %1689 = vmatpush3.bf16.msra.mxu1 %v1893_v12 }
 0x5ba   :  { %v1358_v14 = vpop.f32.mrb[16].mxu1 }
 0x5bb   :  { %v1359_v15 = vadd.f32 %v1583_v13, %v1358_v14  ;;  %v1684_v16 = vpop.f32.mrb[17].mxu1 }
 0x5bc   :  { %v1361_v17 = vpop.f32.mrb[18].mxu1 }
 0x5bd   :  { %v1364_v18 = vmax.f32 %v1359_v15, 0.0  ;;  %v1685_v19 = vpop.f32.mrb[19].mxu1 }
 0x5bf   :  { %v1365_v20 = vpack.c.bf16 %v1364_v18, %v1364_v18 }
 0x5c1   :  { %1691 = vmatmul.mubr.msk.bf16.vlgmr.msra.gmra.mrb[20].mxu1 %vm1389_vm3, %v1365_v20 }
 0x694   :  { %v1427_v21 = vpop.f32.mrb[20].mxu1 }
 0x695   :  { %v1428_v22 = vadd.f32 %v1589_v2, %v1427_v21  ;;  %v1692_v23 = vpop.f32.mrb[21].mxu1 }
 0x696   :  { %v1430_v24 = vpop.f32.mrb[22].mxu1 }
 0x697   :  { %1433 = vst [vmem:[#allocation5] sm:$0xff] %v1428_v22  ;;  %v1693_v25 = vpop.f32.mrb[23].mxu1 }
 0x698   :  { %1927 = shalt.err (!%p1924_p12)
}
 0x699   :  { %s1928_s14 = scalar_lea.hbm %s2244_s15, 128 }
 0x69a   :  { %p1929_p13 = scmp.ne.s32.totalorder %s2244_s15, %s1928_s14  ;;  %p1932_p0 = scmp.lt.u32.totalorder %s1928_s14, %s2244_s15 }
 0x69c   :  { %p1934_p1 = pnand %p1932_p0, %p1929_p13 }
 0x69e   :  { %1937 = shalt.err (!%p1934_p1)
}
 0x69f   :  { %1443 = dma.vmem_to_hbm [thread:$0]  %s1441_s13, 128, %s2244_s15, [#allocation4]  }
 0x6a0   :  { %1940 = dma.done.wait [#allocation4], 128  }
 0x6a1   :  { %1941 = vsyncadd [#allocation4], 4294967168 }
 0x6a2   :  { %1447 = vsyncpa [#allocation3], 1 }
 0x6a3   :  { %1448 = vsyncpa [#allocation4], 1 }

</bundles_post_ra>
